<compile_context>
chip_gen: v6e
topology: v6e:2x2x1
jax: 0.10.0
libtpu: 0.0.40
codegen_flags: <defaults>
</compile_context>

<pallas_src>
import functools
import math

import jax
import jax.numpy as jnp
from jax.experimental import pallas as pl
from jax.experimental.pallas import tpu as pltpu


def _round_up(x, m):
    return ((x + m - 1) // m) * m


def _cdiv(a, b):
    return (a + b - 1) // b


# ----------------------------- Pallas kernel --------------------------------
def _mlp_edge_kernel(x_ref, w1_ref, b1_ref, w2_ref, b2_ref, o_ref):
    """o_row = relu(x @ w1 + b1) @ w2^T + b2, stored lane-dense as (1, TE).

    x_ref : [TE, 2D] bf16     w1_ref: [2D, H] bf16
    b1_ref: [1, H]  f32       w2_ref: [1, H]  bf16
    b2_ref: [1, 1]  f32 (SMEM scalar)
    o_ref : [1, TE] f32
    """
    h = jnp.dot(x_ref[...], w1_ref[...], preferred_element_type=jnp.float32)
    h = jnp.maximum(h + b1_ref[...], 0.0)                       # [TE, H] f32 (VPU)
    # Layer 2 as (1,H) . (TE,H)^T -> (1,TE): the result pops out lane-major, so
    # the output DMA is a full-width row store instead of a 1-lane column.
    # bf16 operands (f32 accumulation) keep the MXU single-pass on v5e and
    # halve the cost of any XLU transpose of h on v6e/v7x.
    out = jax.lax.dot_general(
        w2_ref[...], h.astype(jnp.bfloat16),
        dimension_numbers=(((1,), (1,)), ((), ())),
        preferred_element_type=jnp.float32)                     # [1, TE]
    o_ref[...] = (out + b2_ref[0, 0]).astype(o_ref.dtype)


# --------------------------- host-side wrappers ------------------------------
def prepare_view_learner_params(params):
    """One-time weight prep (cast / reshape) hoisted out of the hot path."""
    w1, b1, w2, b2 = params
    h_dim = w1.shape[1]
    return {
        "w1": w1.astype(jnp.bfloat16),                     # [2D, H] bf16
        "b1": b1.reshape(1, h_dim).astype(jnp.float32),    # [1, H]  f32
        "w2": w2.reshape(1, h_dim).astype(jnp.bfloat16),   # [1, H]  bf16
        "b2": b2.reshape(1, 1).astype(jnp.float32),        # [1, 1]  f32 (SMEM)
    }


def edge_weight_mlp(node_feat, edge_feat, node_idx, edge_idx, prep, *,
                    tile_e=2048):
    """Gather + 2-layer MLP over the incidence pairs.  Returns [E, 1] f32."""
    e = node_idx.shape[0]
    d = node_feat.shape[1]
    h_dim = prep["w1"].shape[1]
    if e == 0:                                   # guard: zero-length grid
        return jnp.zeros((0, 1), jnp.float32)
    # Padded rows are gathered with index 0; tables must be non-empty.
    assert node_feat.shape[0] > 0 and edge_feat.shape[0] > 0

    # --- tiling ---------------------------------------------------------------
    # tile is a multiple of 128 so the lane-dense (1, tile) output block never
    # falls back to masked partial stores; large tiles amortize the ~0.35 us
    # per-grid-step overhead; >= 2 tiles lets both v7x TensorCores take grid
    # steps (dimension_semantics="parallel"), a no-op on single-TC v5e/v6e.
    e_pad0 = _round_up(e, 128)
    tile = max(128, min(_round_up(tile_e, 128), e_pad0))
    n_tiles = max(1, _cdiv(e_pad0, tile))
    if n_tiles == 1 and e_pad0 >= 256:
        n_tiles = 2
    tile = _round_up(_cdiv(e_pad0, n_tiles), 128)
    e_pad = tile * n_tiles

    # --- gather + fuse both streams into one [e_pad, 2D] bf16 slab -------------
    pad = e_pad - e
    node_idx_p = jnp.pad(node_idx, (0, pad))     # pad with index 0 (always valid)
    edge_idx_p = jnp.pad(edge_idx, (0, pad))
    x = jnp.concatenate(
        [node_feat.astype(jnp.bfloat16)[node_idx_p],
         edge_feat.astype(jnp.bfloat16)[edge_idx_p]], axis=1)   # [e_pad, 2D] bf16
    # TODO(synk): at production E the next step is moving this gather into the
    # kernel (VMEM-resident feature tables + per-tile index vectors) to cut the
    # activation HBM traffic roughly in half; kept in the wrapper here because
    # Mosaic's in-kernel vector-gather lowering support is version-dependent.

    flops = 2 * e_pad * (2 * d) * h_dim + 2 * e_pad * h_dim
    bytes_accessed = (e_pad * (2 * d) * 2          # x (bf16)
                      + e_pad * 4                  # output row (f32)
                      + (2 * d) * h_dim * 2        # w1
                      + h_dim * (4 + 2) + 4)       # b1, w2, b2

    out = pl.pallas_call(
        _mlp_edge_kernel,
        out_shape=jax.ShapeDtypeStruct((1, e_pad), jnp.float32),
        grid_spec=pltpu.PrefetchScalarGridSpec(
            num_scalar_prefetch=0,
            grid=(n_tiles,),
            in_specs=[
                pl.BlockSpec((tile, 2 * d), lambda i: (i, 0)),      # x tile
                pl.BlockSpec((2 * d, h_dim), lambda i: (0, 0)),     # w1
                pl.BlockSpec((1, h_dim), lambda i: (0, 0)),         # b1
                pl.BlockSpec((1, h_dim), lambda i: (0, 0)),         # w2 row
                pl.BlockSpec(memory_space=pltpu.MemorySpace.SMEM),  # b2 scalar
            ],
            out_specs=pl.BlockSpec((1, tile), lambda i: (0, i)),
        ),
        compiler_params=pltpu.CompilerParams(
            dimension_semantics=("parallel",)),
        cost_estimate=pl.CostEstimate(
            flops=flops, transcendentals=0, bytes_accessed=bytes_accessed),
    )(x, prep["w1"], prep["b1"], prep["w2"], prep["b2"])

    # Padded rows hold relu(b1)@w2+b2 garbage; slice them off here.
    return out[0, :e][:, None]                           # [E, 1] f32


# --------------------------- ViewLearner wrapper -----------------------------
def xavier_uniform(key, fan_in, fan_out, shape):
    bound = math.sqrt(6.0 / (fan_in + fan_out))
    return jax.random.uniform(key, shape, jnp.float32, -bound, bound)


def init_view_learner_params(key, input_dim, viewer_hidden_dim=64):
    k1, k2 = jax.random.split(key)
    # Stored as [in, out] (transposed vs. PyTorch's [out, in]); math identical.
    w1 = xavier_uniform(k1, 2 * input_dim, viewer_hidden_dim,
                        (2 * input_dim, viewer_hidden_dim))
    b1 = jnp.zeros((viewer_hidden_dim,), jnp.float32)
    w2 = xavier_uniform(k2, viewer_hidden_dim, 1, (viewer_hidden_dim, 1))
    b2 = jnp.zeros((1,), jnp.float32)
    return w1, b1, w2, b2


def view_learner_forward(prep, node_feat, edge_feat, edge_index,
                         num_self_loop, *, tile_e=2048):
    """Mirrors ViewLearner.forward.

    node_feat : [N, D]      edge_feat : [M, D]
    edge_index: [2, nnz] int32; the last `num_self_loop` columns are self-loops.
    Returns weight_logits: [nnz, 1]  (== [E + num_self_loop, 1])
    """
    # Glue: drop self-loop columns, split into node / hyperedge index vectors.
    non_self = edge_index[:, : edge_index.shape[1] - num_self_loop]
    node_idx, edge_idx = non_self[0], non_self[1]

    # Hot path: gather + 2-layer MLP (Pallas kernel).
    edge_weight = edge_weight_mlp(node_feat, edge_feat, node_idx, edge_idx,
                                  prep, tile_e=tile_e)            # [E, 1]

    # Self-loop logits fixed at 10.0, appended at the end.
    self_loop_weight = jnp.full((num_self_loop, 1), 10.0, jnp.float32)
    return jnp.concatenate([edge_weight, self_loop_weight], axis=0)


# ----------------------------------- main ------------------------------------
if __name__ == "__main__":
    key = jax.random.PRNGKey(0)
    k_node, k_edge, k_ni, k_ei, k_params = jax.random.split(key, 5)

    # Small synthetic hypergraph.
    D = 32            # input_dim (per-entity embedding size)
    H = 64            # viewer_hidden_dim
    N_NODES = 16
    N_HEDGES = 8      # num_hyperedges
    E = 20            # non-self-loop incidence pairs
    S = 6             # num_self_loop  (totedges = E + S conceptually)

    # TODO(synk): the external `encoder` is opaque here; node/edge features are
    # synthesized instead of being produced by it.
    node_feat = jax.random.normal(k_node, (N_NODES, D), jnp.float32)
    edge_feat = jax.random.normal(k_edge, (N_HEDGES, D), jnp.float32)

    node_idx = jax.random.randint(k_ni, (E,), 0, N_NODES, jnp.int32)
    edge_idx = jax.random.randint(k_ei, (E,), 0, N_HEDGES, jnp.int32)
    # Self-loop columns appended at the end (their indices are never used).
    sl_node = jnp.arange(S, dtype=jnp.int32)
    sl_edge = jnp.arange(S, dtype=jnp.int32)
    edge_index = jnp.stack(
        [jnp.concatenate([node_idx, sl_node]),
         jnp.concatenate([edge_idx, sl_edge])], axis=0)        # [2, E+S]

    params = init_view_learner_params(k_params, D, H)
    prep = prepare_view_learner_params(params)                 # one-time weight prep

    fwd = jax.jit(functools.partial(view_learner_forward, num_self_loop=S))
    weight_logits = fwd(prep, node_feat, edge_feat, edge_index)
    weight_logits = jax.block_until_ready(weight_logits)

    # Sanity check against a pure-JAX reference of the same math (operands
    # bf16-rounded exactly as in the kernel; accumulation in f32).
    w1, b1, w2, b2 = params
    nf_b = node_feat.astype(jnp.bfloat16).astype(jnp.float32)
    ef_b = edge_feat.astype(jnp.bfloat16).astype(jnp.float32)
    w1_b = w1.astype(jnp.bfloat16).astype(jnp.float32)
    w2_b = w2.astype(jnp.bfloat16).astype(jnp.float32)
    total_ref = jnp.concatenate([nf_b[node_idx], ef_b[edge_idx]], axis=1)
    h_ref = jnp.maximum(total_ref @ w1_b + b1, 0.0)
    h_ref_b = h_ref.astype(jnp.bfloat16).astype(jnp.float32)
    ref_edge = h_ref_b @ w2_b + b2
    ref = jnp.concatenate([ref_edge, jnp.full((S, 1), 10.0, jnp.float32)], 0)

    assert weight_logits.shape == (E + S, 1), weight_logits.shape
    assert jnp.allclose(weight_logits, ref, atol=1e-2, rtol=1e-2)

    print("KERNEL_OK")
</pallas_src>

<mosaic_0001>
module attributes {stable_mosaic.version = 11 : i64} {
  func.func @_mlp_edge_kernel(%arg0: i32, %arg1: memref<128x64xbf16, #tpu.memory_space<vmem>>, %arg2: memref<64x64xbf16, #tpu.memory_space<vmem>>, %arg3: memref<1x64xf32, #tpu.memory_space<vmem>>, %arg4: memref<1x64xbf16, #tpu.memory_space<vmem>>, %arg5: memref<1x1xf32, #tpu.memory_space<smem>>, %arg6: memref<1x128xf32, #tpu.memory_space<vmem>>) attributes {dimension_semantics = [#tpu.dimension_semantics<parallel>], iteration_bounds = array<i64: 1>, scalar_prefetch = 0 : i64, scratch_operands = 0 : i64, tpu.core_type = #tpu.core_type<tc>, window_params = [{transform_indices = @transform_0, window_bounds = array<i64: 128, 64>}, {pipeline_mode = #tpu.pipeline_mode<synchronous>, transform_indices = @transform_1, window_bounds = array<i64: 64, 64>}, {pipeline_mode = #tpu.pipeline_mode<synchronous>, transform_indices = @transform_2, window_bounds = array<i64: 1, 64>}, {pipeline_mode = #tpu.pipeline_mode<synchronous>, transform_indices = @transform_3, window_bounds = array<i64: 1, 64>}, {transform_indices = @transform_4, window_bounds = array<i64: 1, 1>}, {transform_indices = @transform_5, window_bounds = array<i64: 1, 128>}]} {
    %c0 = arith.constant 0 : index
    %c0_0 = arith.constant 0 : index
    %0 = vector.load %arg1[%c0, %c0_0] : memref<128x64xbf16, #tpu.memory_space<vmem>>, vector<128x64xbf16>
    %c0_1 = arith.constant 0 : index
    %c0_2 = arith.constant 0 : index
    %1 = vector.load %arg2[%c0_1, %c0_2] : memref<64x64xbf16, #tpu.memory_space<vmem>>, vector<64x64xbf16>
    %cst = arith.constant dense<0.000000e+00> : vector<128x64xf32>
    %2 = tpu.matmul %0, %1, %cst {dimension_numbers = #tpu.dot_dimension_numbers<[1], [0], [0], [1], [0, 0, 1, 1], [], []>} : vector<128x64xbf16>, vector<64x64xbf16>, vector<128x64xf32> -> vector<128x64xf32>
    %c0_3 = arith.constant 0 : index
    %c0_4 = arith.constant 0 : index
    %3 = vector.load %arg3[%c0_3, %c0_4] : memref<1x64xf32, #tpu.memory_space<vmem>>, vector<1x64xf32>
    %4 = vector.broadcast %3 : vector<1x64xf32> to vector<128x64xf32>
    %5 = arith.addf %2, %4 : vector<128x64xf32>
    %cst_5 = arith.constant 0.000000e+00 : f32
    %6 = vector.broadcast %cst_5 : f32 to vector<128x64xf32>
    %7 = arith.maximumf %5, %6 : vector<128x64xf32>
    %c0_6 = arith.constant 0 : index
    %c0_7 = arith.constant 0 : index
    %8 = vector.load %arg4[%c0_6, %c0_7] : memref<1x64xbf16, #tpu.memory_space<vmem>>, vector<1x64xbf16>
    %9 = arith.truncf %7 : vector<128x64xf32> to vector<128x64xbf16>
    %cst_8 = arith.constant dense<0.000000e+00> : vector<1x128xf32>
    %10 = tpu.matmul %8, %9, %cst_8 {dimension_numbers = #tpu.dot_dimension_numbers<[1], [1], [0], [0], [0, 0, 1, 0], [], []>} : vector<1x64xbf16>, vector<128x64xbf16>, vector<1x128xf32> -> vector<1x128xf32>
    %c0_9 = arith.constant 0 : index
    %c0_10 = arith.constant 0 : index
    %11 = memref.load %arg5[%c0_9, %c0_10] : memref<1x1xf32, #tpu.memory_space<smem>>
    %12 = vector.broadcast %11 : f32 to vector<1x128xf32>
    %13 = arith.addf %10, %12 : vector<1x128xf32>
    %c0_11 = arith.constant 0 : index
    %c0_12 = arith.constant 0 : index
    %14 = vector.load %arg6[%c0_11, %c0_12] : memref<1x128xf32, #tpu.memory_space<vmem>>, vector<1x128xf32>
    tpu.vector_store %arg6[%c0_11, %c0_12], %13 {strides = array<i32>} : memref<1x128xf32, #tpu.memory_space<vmem>>, vector<1x128xf32>,
    return
  }
  func.func @transform_0(%arg0: i32) -> (i32, i32) {
    %c0_i32 = arith.constant 0 : i32
    %c0_i32_0 = arith.constant 0 : i32
    return %arg0, %c0_i32 : i32, i32
  }
  func.func @transform_1(%arg0: i32) -> (i32, i32) {
    %c0_i32 = arith.constant 0 : i32
    %c0_i32_0 = arith.constant 0 : i32
    %c0_i32_1 = arith.constant 0 : i32
    return %c0_i32, %c0_i32_0 : i32, i32
  }
  func.func @transform_2(%arg0: i32) -> (i32, i32) {
    %c0_i32 = arith.constant 0 : i32
    %c0_i32_0 = arith.constant 0 : i32
    %c0_i32_1 = arith.constant 0 : i32
    return %c0_i32, %c0_i32_0 : i32, i32
  }
  func.func @transform_3(%arg0: i32) -> (i32, i32) {
    %c0_i32 = arith.constant 0 : i32
    %c0_i32_0 = arith.constant 0 : i32
    %c0_i32_1 = arith.constant 0 : i32
    return %c0_i32, %c0_i32_0 : i32, i32
  }
  func.func @transform_4(%arg0: i32) -> (i32, i32) {
    %c0_i32 = arith.constant 0 : i32
    %c0_i32_0 = arith.constant 0 : i32
    %c0_i32_1 = arith.constant 0 : i32
    return %c0_i32, %c0_i32_0 : i32, i32
  }
  func.func @transform_5(%arg0: i32) -> (i32, i32) {
    %c0_i32 = arith.constant 0 : i32
    %c0_i32_0 = arith.constant 0 : i32
    return %c0_i32, %arg0 : i32, i32
  }
}

</mosaic_0001>

<bundles_post_ra>
// kernel: view_learner_forward.1
= control target key start
LH: loop header
LB: loop body
LE: loop exit
PB: predicated region body
PF: predicated region fallthrough
CT: control target
= control target key end

     0   :  { %vm117_vm0 = vcmask 523264   ;;  %v439_v12 = vmov 0.0   ;;  %vm440_vm1 = vmmov 0   ;;  %s563_s1 = inlined_call_operand.vmem [shape: bf16[64,64], index: 1, kind: input, shape index: {}]   ;;  %s564_s0 = inlined_call_operand.vmem [shape: bf16[128,64], index: 0, kind: input, shape index: {}]   ;;  %s565_s2 = inlined_call_operand.vmem [shape: f32[1,64], index: 2, kind: input, shape index: {}]   ;;  %s566_s3 = inlined_call_operand.vmem [shape: bf16[1,64], index: 3, kind: input, shape index: {}]   ;;  %s567_s4 = inlined_call_operand.<no memory space> [shape: f32[1,1], index: 4, kind: input, shape index: {}]   ;;  %s568_s5 = inlined_call_operand.vmem [shape: f32[1,128], index: 5, kind: output, shape index: {}]  }
   0x1   :  { %v427_v0 = vld [vmem:[%s563_s1 + $0x18] sm:$0xff]   ;;  %v428_v1 = vld [vmem:[%s563_s1 + $0x10] sm:$0xff]   ;;  %v429_v2 = vld [vmem:[%s563_s1 + $0x8] sm:$0xff]   ;;  %405 = vmatprep.subr.bf16.mxu1 %v439_v12  ;;  %421 = vmatprep.mubr.msk.bf16.mxu1 %vm440_vm1, %v439_v12 }
   0x2   :  { %381 = vmatprep.subr.bf16.mxu0 %v427_v0  ;;  %v431_v3 = vld [vmem:[%s564_s0] sm:$0xff]   ;;  %v432_v5 = vld [vmem:[%s564_s0 + $0x8] sm:$0xff]   ;;  %v433_v6 = vld [vmem:[%s564_s0 + $0x10] sm:$0xff]  }
   0x3   :  { %382 = vmatpush3.bf16.msra.mxu0 %v427_v0  ;;  %389 = vmatprep.mubr.msk.bf16.mxu0 %vm117_vm0, %v431_v3  ;;  %v430_v4 = vld [vmem:[%s563_s1] sm:$0xff]   ;;  %v434_v7 = vld [vmem:[%s564_s0 + $0x18] sm:$0xff]   ;;  %v436_v9 = vld [vmem:[%s564_s0 + $0x28] sm:$0xff]  }
   0x4   :  { %383 = vmatprep.subr.bf16.mxu0 %v428_v1  ;;  %v435_v8 = vld [vmem:[%s564_s0 + $0x20] sm:$0xff]   ;;  %v437_v10 = vld [vmem:[%s564_s0 + $0x30] sm:$0xff]   ;;  %v438_v11 = vld [vmem:[%s564_s0 + $0x38] sm:$0xff]  }
   0x5   :  { %v520_v14 = vld [vmem:[%s565_s2] ss:$0 sm:$0xff] }
   0x7   :  { %384 = vmatpush3.bf16.msra.mxu0 %v428_v1 }
   0x8   :  { %385 = vmatprep.subr.bf16.mxu0 %v429_v2 }
   0xb   :  { %386 = vmatpush3.bf16.msra.mxu0 %v429_v2 }
   0xc   :  { %387 = vmatprep.subr.bf16.mxu0 %v430_v4 }
   0xf   :  { %388 = vmatpush3.bf16.msra.mxu0 %v430_v4 }
  0x12   :  { %390 = vmatmul.mubr.msk.bf16.vlgmr.msra.gmra.mxu0 %vm117_vm0, %v432_v5 }
  0x13   :  { %393 = vmatprep.mubr.msk.bf16.mxu0 %vm117_vm0, %v433_v6 }
  0x1a   :  { %394 = vmatmul.mubr.msk.bf16.gmra.mxu0 %vm117_vm0, %v434_v7 }
  0x1b   :  { %397 = vmatprep.mubr.msk.bf16.mxu0 %vm117_vm0, %v435_v8 }
  0x22   :  { %398 = vmatmul.mubr.msk.bf16.gmra.mxu0 %vm117_vm0, %v436_v9 }
  0x23   :  { %401 = vmatprep.mubr.msk.bf16.mxu0 %vm117_vm0, %v437_v10 }
  0x2a   :  { %402 = vmatmul.mubr.msk.bf16.gmra.mxu0 %vm117_vm0, %v438_v11 }
  0xd2   :  { %v391_v13 = vpop.f32.mrf.mxu0 }
  0xd3   :  { %v185_v16 = vadd.f32 %v391_v13, %v520_v14 }
  0xd4   :  { %v176_v15 = vpop.f32.mrf.mxu0 }
  0xd5   :  { %v177_v18 = vadd.f32 %v520_v14, %v176_v15  ;;  %v241_v21 = vmax.f32 %v185_v16, 0.0  ;;  %v255_v15 = vld [vmem:[%s566_s3] sm:$0x1]  ;;  %v265_v16 = vstv %s567_s4 }
  0xd6   :  { %v392_v17 = vpop.f32.mrf.mxu0 }
  0xd7   :  { %v188_v19 = vadd.f32 %v392_v17, %v520_v14  ;;  %v239_v25 = vmax.f32 %v177_v18, 0.0 }
  0xd8   :  { %v179_v20 = vpop.f32.mrf.mxu0 }
  0xd9   :  { %v242_v22 = vmax.f32 %v188_v19, 0.0  ;;  %v180_v23 = vadd.f32 %v520_v14, %v179_v20 }
  0xda   :  { %v395_v24 = vpop.f32.mrf.mxu0 }
  0xdb   :  { %v257_v26 = vpack.c.bf16 %v242_v22, %v241_v21  ;;  %v240_v27 = vmax.f32 %v180_v23, 0.0  ;;  %v201_v0 = vadd.f32 %v395_v24, %v520_v14 }
  0xdc   :  { %v192_v28 = vpop.f32.mrf.mxu0 }
  0xdd   :  { %v256_v29 = vpack.c.bf16 %v240_v27, %v239_v25  ;;  %v245_v3 = vmax.f32 %v201_v0, 0.0  ;;  %v193_v6 = vadd.f32 %v520_v14, %v192_v28  ;;  %v273_v13 = vsel %vm117_vm0, %v257_v26, 0 }
  0xde   :  { %v396_v30 = vpop.f32.mrf.mxu0 }
  0xdf   :  { %v204_v62 = vadd.f32 %v396_v30, %v520_v14  ;;  %v243_v9 = vmax.f32 %v193_v6, 0.0 }
  0xe0   :  { %v195_v31 = vpop.f32.mrf.mxu0 }
  0xe1   :  { %v246_v1 = vmax.f32 %v204_v62, 0.0  ;;  %v196_v5 = vadd.f32 %v520_v14, %v195_v31 }
  0xe2   :  { %v399_v32 = vpop.f32.mrf.mxu0 }
  0xe3   :  { %v217_v52 = vadd.f32 %v399_v32, %v520_v14  ;;  %v259_v4 = vpack.c.bf16 %v246_v1, %v245_v3  ;;  %v244_v7 = vmax.f32 %v196_v5, 0.0 }
  0xe4   :  { %v208_v33 = vpop.f32.mrf.mxu0 }
  0xe5   :  { %v249_v55 = vmax.f32 %v217_v52, 0.0  ;;  %v209_v58 = vadd.f32 %v520_v14, %v208_v33  ;;  %v279_v8 = vsel %vm117_vm0, %v259_v4, 0  ;;  %v258_v10 = vpack.c.bf16 %v244_v7, %v243_v9 }
  0xe6   :  { %v400_v34 = vpop.f32.mrf.mxu0 }
  0xe7   :  { %v220_v50 = vadd.f32 %v400_v34, %v520_v14  ;;  %v247_v61 = vmax.f32 %v209_v58, 0.0  ;;  %v276_v11 = vsel %vm117_vm0, %v258_v10, 0 }
  0xe8   :  { %v211_v35 = vpop.f32.mrf.mxu0 }
  0xe9   :  { %v250_v53 = vmax.f32 %v220_v50, 0.0  ;;  %v212_v57 = vadd.f32 %v520_v14, %v211_v35 }
  0xea   :  { %v403_v36 = vpop.f32.mrf.mxu0 }
  0xeb   :  { %v233_v38 = vadd.f32 %v403_v36, %v520_v14  ;;  %v261_v56 = vpack.c.bf16 %v250_v53, %v249_v55  ;;  %v248_v59 = vmax.f32 %v212_v57, 0.0 }
  0xec   :  { %v224_v37 = vpop.f32.mrf.mxu0 }
  0xed   :  { %v253_v42 = vmax.f32 %v233_v38, 0.0  ;;  %v225_v45 = vadd.f32 %v520_v14, %v224_v37  ;;  %v285_v60 = vsel %vm117_vm0, %v261_v56, 0  ;;  %v260_v63 = vpack.c.bf16 %v248_v59, %v247_v61 }
  0xee   :  { %v404_v39 = vpop.f32.mrf.mxu0 }
  0xef   :  { %v236_v40 = vadd.f32 %v404_v39, %v520_v14  ;;  %v251_v49 = vmax.f32 %v225_v45, 0.0  ;;  %v282_v2 = vsel %vm117_vm0, %v260_v63, 0 }
  0xf0   :  { %v227_v41 = vpop.f32.mrf.mxu0 }
  0xf1   :  { %v254_v43 = vmax.f32 %v236_v40, 0.0  ;;  %v228_v44 = vadd.f32 %v520_v14, %v227_v41  ;;  %v270_v14 = vsel %vm117_vm0, %v256_v29, 0 }
  0xf3   :  { %v263_v46 = vpack.c.bf16 %v254_v43, %v253_v42  ;;  %v252_v47 = vmax.f32 %v228_v44, 0.0 }
  0xf5   :  { %v291_v48 = vsel %vm117_vm0, %v263_v46, 0  ;;  %v262_v51 = vpack.c.bf16 %v252_v47, %v251_v49 }
  0xf6   :  { %406 = vmatpush3.bf16.xpose.msra.mxu1 %v291_v48 }
  0xf7   :  { %407 = vmatprep.subr.bf16.mxu1 %v439_v12  ;;  %v288_v54 = vsel %vm117_vm0, %v262_v51, 0 }
  0xfe   :  { %408 = vmatpush3.bf16.xpose.msra.mxu1 %v288_v54 }
  0xff   :  { %409 = vmatprep.subr.bf16.mxu1 %v439_v12 }
 0x106   :  { %410 = vmatpush3.bf16.xpose.msra.mxu1 %v285_v60 }
 0x107   :  { %411 = vmatprep.subr.bf16.mxu1 %v439_v12 }
 0x10e   :  { %412 = vmatpush3.bf16.xpose.msra.mxu1 %v282_v2 }
 0x10f   :  { %413 = vmatprep.subr.bf16.mxu1 %v439_v12 }
 0x116   :  { %414 = vmatpush3.bf16.xpose.msra.mxu1 %v279_v8 }
 0x117   :  { %415 = vmatprep.subr.bf16.mxu1 %v439_v12 }
 0x11e   :  { %416 = vmatpush3.bf16.xpose.msra.mxu1 %v276_v11 }
 0x11f   :  { %417 = vmatprep.subr.bf16.mxu1 %v439_v12 }
 0x126   :  { %418 = vmatpush3.bf16.xpose.msra.mxu1 %v273_v13 }
 0x127   :  { %419 = vmatprep.subr.bf16.mxu1 %v439_v12 }
 0x12e   :  { %420 = vmatpush3.bf16.xpose.msra.mxu1 %v270_v14 }
 0x135   :  { %422 = vmatmul.mubr.msk.bf16.vlgmr.msra.gmra.mxu1 %vm117_vm0, %v255_v15 }
 0x1f5   :  { %v327_v17 = vpop.f32.mrf.mxu1 }
 0x1f6   :  { %v328_v18 = vadd.f32 %v327_v17, %v265_v16 }
 0x1f7   :  { %v423_v19 = vpop.f32.mrf.mxu1 }
 0x1f8   :  { %333 = vst [vmem:[%s568_s5] sm:$0x1] %v328_v18 }
 0x1f9   :  { %v330_v12 = vpop.f32.mrf.mxu1 }
 0x1fb   :  { %v424_v20 = vpop.f32.mrf.mxu1 }

</bundles_post_ra>
